<compile_context>
chip_gen: v7x
topology: tpu7x:2x2x1
jax: 0.10.0
libtpu: 0.0.40
codegen_flags: <defaults>
</compile_context>

<pallas_src>
import jax
import jax.numpy as jnp
import numpy as np
from jax.experimental import pallas as pl
from jax.experimental.pallas import tpu as pltpu


_MIB = 1 << 20
_FUSED_VMEM_BUDGET = 40 * _MIB   # conservative: leaves headroom under v7x's 64 MiB VMEM
_VMEM_LIMIT_CAP = 56 * _MIB


# ---------------------------------------------------------------------------
# Host-side parameter folding (exact: every stage before the ReLU is affine)
# ---------------------------------------------------------------------------
def fold_params(params, C):
    """Fold conv_max, conv_avg, the 1x1 conv inside conv_re and eval-mode BN into one
    (C, 2C) weight + (C, 1) bias acting on the sublane-stacked [max; avg] profiles."""
    hp = "highest"
    w_re_m = params["w_re"][:, :C]                     # acts on the 'max' branch
    w_re_a = params["w_re"][:, C:]                     # acts on the 'avg' branch
    a_max = jnp.matmul(w_re_m, params["w_max"], precision=hp)            # (C, C)
    a_avg = jnp.matmul(w_re_a, params["w_avg"], precision=hp)            # (C, C)
    b0 = (jnp.matmul(w_re_m, params["b_max"], precision=hp)
          + jnp.matmul(w_re_a, params["b_avg"], precision=hp)
          + params["b_re"])                                              # (C, 1)
    w_all = params["bn_scale"] * jnp.concatenate([a_max, a_avg], axis=1)  # (C, 2C)
    b_all = params["bn_scale"] * b0 + params["bn_shift"]                  # (C, 1)
    return w_all, b_all


# ---------------------------------------------------------------------------
# H-chunk pickers
# ---------------------------------------------------------------------------
def _pick_fused_inner_chunk(C, H, W, target_bytes=1 * _MIB, max_chunks=16):
    """Chunk for the in-kernel apply loop of the fused kernel: the largest divisor of H
    whose (C, hb, W) f32 chunk stays under target_bytes, keeping the number of
    statically-unrolled chunks <= max_chunks."""
    min_hb = max(1, -(-H // max_chunks))
    cands = [d for d in range(1, H + 1) if H % d == 0 and d >= min_hb]
    fitting = [d for d in cands if C * d * W * 4 <= target_bytes]
    return max(fitting) if fitting else min(cands)


def _pick_fallback_chunk(C, H, W, target_bytes=4 * _MIB):
    """Shared H-chunk for the two-pass fallback: the LARGEST divisor of H whose
    (C, hc, W) f32 block stays under target_bytes (amortizes per-step overhead),
    preferring sublane-friendly (multiple-of-8) chunks."""
    cands = [d for d in range(1, H + 1) if H % d == 0 and (d % 8 == 0 or d == H)]
    fitting = [d for d in cands if C * d * W * 4 <= target_bytes]
    return max(fitting) if fitting else min(cands)


# ---------------------------------------------------------------------------
# Fused single-pass kernel (primary path): pooling + folded convs + apply
# ---------------------------------------------------------------------------
def _make_fused_kernel(C, H, W, hb):
    inv_w = 1.0 / W
    inv_h = 1.0 / H
    n_chunks = H // hb

    def kernel(x_ref, w_ref, b_ref, o_ref):
        x = x_ref[...]                                       # (C, H, W) f32

        # Coordinate pooling (means computed as sum * 1/len).
        row_max = jnp.max(x, axis=2)                         # (C, H)  reduce over W
        row_avg = jnp.sum(x, axis=2) * inv_w                 # (C, H)
        col_max = jnp.max(x, axis=1)                         # (C, W)  reduce over H
        col_avg = jnp.sum(x, axis=1) * inv_h                 # (C, W)

        # Sublane-only stacking: rows [0:C] = max profile, rows [C:2C] = avg profile.
        pooled_h = jnp.concatenate([row_max, row_avg], axis=0)   # (2C, H)
        pooled_w = jnp.concatenate([col_max, col_avg], axis=0)   # (2C, W)

        w = w_ref[...]                                       # (C, 2C) folded weights
        bias = b_ref[...]                                    # (C, 1)
        re_h = jnp.maximum(
            jnp.dot(w, pooled_h, precision="highest",
                    preferred_element_type=jnp.float32) + bias, 0.0)      # (C, H)
        re_w = jnp.maximum(
            jnp.dot(w, pooled_w, precision="highest",
                    preferred_element_type=jnp.float32) + bias, 0.0)      # (C, W)

        reh3 = re_h[:, :, None]                              # (C, H, 1): one small relayout
        rew3 = re_w[:, None, :]                              # (C, 1, W): free

        # Apply sigmoid(re_h x re_w) * x chunk-by-chunk over H so the (C, hb, W)
        # intermediate stays bounded (<= ~1 MiB) regardless of image size.
        for j in range(n_chunks):
            h0 = j * hb
            logits = reh3[:, h0:h0 + hb, :] * rew3           # (C, hb, W)
            attn = 0.5 * jnp.tanh(0.5 * logits) + 0.5        # sigmoid via EUP tanh, no divide
            o_ref[:, h0:h0 + hb, :] = attn * x_ref[:, h0:h0 + hb, :]

    return kernel


def _sfca_fused(x, w_all, b_all, hb, vmem_need):
    N, C, H, W = x.shape
    cost = pl.CostEstimate(
        flops=int(N * (10 * C * H * W + 4 * C * C * (H + W))),
        transcendentals=int(N * C * H * W),
        bytes_accessed=int(4 * (2 * N * C * H * W + 2 * C * C + C)),
    )
    return pl.pallas_call(
        _make_fused_kernel(C, H, W, hb),
        out_shape=jax.ShapeDtypeStruct((N, C, H, W), jnp.float32),
        grid_spec=pltpu.PrefetchScalarGridSpec(
            num_scalar_prefetch=0,
            grid=(N,),
            in_specs=[
                pl.BlockSpec((None, C, H, W), lambda b: (b, 0, 0, 0)),
                pl.BlockSpec((C, 2 * C), lambda b: (0, 0)),
                pl.BlockSpec((C, 1), lambda b: (0, 0)),
            ],
            out_specs=pl.BlockSpec((None, C, H, W), lambda b: (b, 0, 0, 0)),
        ),
        compiler_params=pltpu.CompilerParams(
            dimension_semantics=("parallel",),
            vmem_limit_bytes=int(min(vmem_need + 8 * _MIB, _VMEM_LIMIT_CAP)),
        ),
        cost_estimate=cost,
    )(x, w_all, b_all)


# ---------------------------------------------------------------------------
# Two-pass fallback (large images): bounded-VMEM chunked pooling, then apply
# ---------------------------------------------------------------------------
def _make_profile_kernel(C, H, W, hc):
    inv_w = 1.0 / W
    inv_h = 1.0 / H

    def kernel(x_ref, w_ref, b_ref, reh_ref, rew_ref, cmax_sc, csum_sc):
        j = pl.program_id(1)
        x = x_ref[...]                                       # (C, hc, W)
        w = w_ref[...]                                       # (C, 2C)
        bias = b_ref[...]                                    # (C, 1)

        # Row (H) profiles involve only this chunk's rows -> finalize immediately and
        # write the matching (C, hc) slice of re_h (no cross-chunk state, dense store).
        pooled_h = jnp.concatenate(
            [jnp.max(x, axis=2), jnp.sum(x, axis=2) * inv_w], axis=0)     # (2C, hc)
        reh_ref[...] = jnp.maximum(
            jnp.dot(w, pooled_h, precision="highest",
                    preferred_element_type=jnp.float32) + bias, 0.0)

        # Column (W) profiles need every H row -> accumulate across chunks in scratch.
        cm = jnp.max(x, axis=1)                              # (C, W)
        cs = jnp.sum(x, axis=1)                              # (C, W)

        @pl.when(j == 0)
        def _():
            cmax_sc[...] = cm
            csum_sc[...] = cs

        @pl.when(j > 0)
        def _():
            cmax_sc[...] = jnp.maximum(cmax_sc[...], cm)
            csum_sc[...] = csum_sc[...] + cs

        @pl.when(j == pl.num_programs(1) - 1)
        def _():
            pooled_w = jnp.concatenate(
                [cmax_sc[...], csum_sc[...] * inv_h], axis=0)             # (2C, W)
            rew_ref[...] = jnp.maximum(
                jnp.dot(w, pooled_w, precision="highest",
                        preferred_element_type=jnp.float32) + bias, 0.0)

    return kernel


def _apply_kernel(x_ref, reh_ref, rew_ref, o_ref):
    # x_ref/o_ref: (C, hc, W); reh_ref: (C, hc) chunk of re_h; rew_ref: (C, W).
    logits = reh_ref[...][:, :, None] * rew_ref[...][:, None, :]          # (C, hc, W)
    attn = 0.5 * jnp.tanh(0.5 * logits) + 0.5                             # sigmoid via tanh
    o_ref[...] = attn * x_ref[...]


def _sfca_two_pass(x, w_all, b_all):
    """Fallback for images whose per-batch block does not fit the fused-path budget.
    x is read twice, but both passes have an image-size-independent VMEM footprint."""
    N, C, H, W = x.shape
    hc = _pick_fallback_chunk(C, H, W)
    n_ch = H // hc
    blk = C * hc * W * 4

    # ---- pass 1: pooled profiles -> folded matmul -> ReLU (chunked over H) ----------
    vmem1 = int(2 * blk + 2 * C * hc * 4 + 4 * C * W * 4
                + 4 * (2 * C * C + C) + 8 * _MIB)
    reh, rew = pl.pallas_call(
        _make_profile_kernel(C, H, W, hc),
        out_shape=(jax.ShapeDtypeStruct((N, n_ch, C, hc), jnp.float32),
                   jax.ShapeDtypeStruct((N, C, W), jnp.float32)),
        grid_spec=pltpu.PrefetchScalarGridSpec(
            num_scalar_prefetch=0,
            grid=(N, n_ch),
            in_specs=[
                pl.BlockSpec((None, C, hc, W), lambda b, j: (b, 0, j, 0)),
                pl.BlockSpec((C, 2 * C), lambda b, j: (0, 0)),
                pl.BlockSpec((C, 1), lambda b, j: (0, 0)),
            ],
            out_specs=[
                pl.BlockSpec((None, None, C, hc), lambda b, j: (b, j, 0, 0)),
                pl.BlockSpec((None, C, W), lambda b, j: (b, 0, 0)),
            ],
            scratch_shapes=[
                pltpu.VMEM((C, W), jnp.float32),   # running col-max
                pltpu.VMEM((C, W), jnp.float32),   # running col-sum
            ],
        ),
        compiler_params=pltpu.CompilerParams(
            dimension_semantics=("parallel", "arbitrary"),
            vmem_limit_bytes=min(vmem1, _VMEM_LIMIT_CAP),
        ),
    )(x, w_all, b_all)

    # ---- pass 2: out = sigmoid(re_h x re_w) * x, largest chunk within budget --------
    # NOTE: per-row stores are W lanes wide; the large images that reach this fallback
    # normally have W % 128 == 0 (dense stores).  Small-W images take the fused path.
    vmem2 = int(4 * blk + 2 * C * hc * 4 + 2 * C * W * 4 + 8 * _MIB)
    cost2 = pl.CostEstimate(
        flops=int(4 * N * C * H * W),
        transcendentals=int(N * C * H * W),
        bytes_accessed=int(4 * (2 * N * C * H * W + N * C * (H + W))),
    )
    out = pl.pallas_call(
        _apply_kernel,
        out_shape=jax.ShapeDtypeStruct((N, C, H, W), jnp.float32),
        grid_spec=pltpu.PrefetchScalarGridSpec(
            num_scalar_prefetch=0,
            grid=(N, n_ch),
            in_specs=[
                pl.BlockSpec((None, C, hc, W), lambda b, j: (b, 0, j, 0)),
                pl.BlockSpec((None, None, C, hc), lambda b, j: (b, j, 0, 0)),
                pl.BlockSpec((None, C, W), lambda b, j: (b, 0, 0)),
            ],
            out_specs=pl.BlockSpec((None, C, hc, W), lambda b, j: (b, 0, j, 0)),
        ),
        compiler_params=pltpu.CompilerParams(
            dimension_semantics=("parallel", "parallel"),
            vmem_limit_bytes=min(vmem2, _VMEM_LIMIT_CAP),
        ),
        cost_estimate=cost2,
    )(x, reh, rew)
    return out


# ---------------------------------------------------------------------------
# Wrapper: choose fused single-pass vs. two-pass fallback from the VMEM budget
# ---------------------------------------------------------------------------
def sfca_forward(x, params, *, force_two_pass=False):
    N, C, H, W = x.shape
    w_all, b_all = fold_params(params, C)

    blk = C * H * W * 4
    hb = _pick_fused_inner_chunk(C, H, W)
    # 2x double-buffered (input + output) full-image blocks + bounded apply intermediates.
    fused_need = 4 * blk + 2 * C * hb * W * 4 + 2 * _MIB
    if force_two_pass or fused_need > _FUSED_VMEM_BUDGET:
        return _sfca_two_pass(x, w_all, b_all)
    return _sfca_fused(x, w_all, b_all, hb, fused_need)


# ---------------------------------------------------------------------------
# Pure-JAX reference mirroring the (unfused) PyTorch forward (BN in eval mode)
# ---------------------------------------------------------------------------
def sfca_reference(x, params):
    N, C, H, W = x.shape
    hp = "highest"
    row_max = jnp.max(x, axis=3)                 # (N, C, H)
    col_max = jnp.max(x, axis=2)                 # (N, C, W)
    row_avg = jnp.mean(x, axis=3)
    col_avg = jnp.mean(x, axis=2)
    cat_max = jnp.concatenate([row_max, col_max], axis=-1)   # (N, C, H+W)
    cat_avg = jnp.concatenate([row_avg, col_avg], axis=-1)
    mx = jnp.einsum("oc,ncl->nol", params["w_max"], cat_max,
                    precision=hp) + params["b_max"][None, :, :]
    av = jnp.einsum("oc,ncl->nol", params["w_avg"], cat_avg,
                    precision=hp) + params["b_avg"][None, :, :]
    cat = jnp.concatenate([mx, av], axis=1)                  # (N, 2C, H+W)
    re = jnp.einsum("oc,ncl->nol", params["w_re"], cat,
                    precision=hp) + params["b_re"][None, :, :]
    re = re * params["bn_scale"][None, :, :] + params["bn_shift"][None, :, :]
    re = jnp.maximum(re, 0.0)
    h_part = re[:, :, :H]                                    # (N, C, H)
    w_part = re[:, :, H:]                                    # (N, C, W)
    attn = jax.nn.sigmoid(h_part[:, :, :, None] * w_part[:, :, None, :])
    return attn * x


def init_params(key, C):
    ks = jax.random.split(key, 10)
    eps = 1e-5
    gamma = jax.random.uniform(ks[6], (C,), jnp.float32, 0.5, 1.5)
    beta = 0.1 * jax.random.normal(ks[7], (C,), jnp.float32)
    running_mean = 0.1 * jax.random.normal(ks[8], (C,), jnp.float32)
    running_var = jax.random.uniform(ks[9], (C,), jnp.float32, 0.5, 1.5)
    bn_scale = gamma / jnp.sqrt(running_var + eps)
    bn_shift = beta - running_mean * bn_scale
    return {
        "w_max": 0.3 * jax.random.normal(ks[0], (C, C), jnp.float32),
        "b_max": 0.1 * jax.random.normal(ks[1], (C, 1), jnp.float32),
        "w_avg": 0.3 * jax.random.normal(ks[2], (C, C), jnp.float32),
        "b_avg": 0.1 * jax.random.normal(ks[3], (C, 1), jnp.float32),
        "w_re": 0.3 * jax.random.normal(ks[4], (C, 2 * C), jnp.float32),
        "b_re": 0.1 * jax.random.normal(ks[5], (C, 1), jnp.float32),
        "bn_scale": bn_scale.reshape(C, 1),
        "bn_shift": bn_shift.reshape(C, 1),
    }


if __name__ == "__main__":
    key = jax.random.PRNGKey(0)
    k_x, k_p = jax.random.split(key)

    N, C, H, W = 2, 4, 16, 16
    x = jax.random.normal(k_x, (N, C, H, W), jnp.float32)
    params = init_params(k_p, C)

    ref = jax.block_until_ready(sfca_reference(x, params))

    fwd = jax.jit(sfca_forward, static_argnames=("force_two_pass",))

    # Primary (fused single-pass) path.
    out = jax.block_until_ready(fwd(x, params))
    np.testing.assert_allclose(np.asarray(out), np.asarray(ref), rtol=1e-5, atol=2e-5)

    # Large-image fallback (two-pass) path, exercised here at small shape for coverage.
    out2 = jax.block_until_ready(fwd(x, params, force_two_pass=True))
    np.testing.assert_allclose(np.asarray(out2), np.asarray(ref), rtol=1e-5, atol=2e-5)

    print("KERNEL_OK")
</pallas_src>

<mosaic_0001>
module attributes {stable_mosaic.version = 11 : i64} {
  func.func @kernel(%arg0: i32, %arg1: memref<1x4x16x16xf32, #tpu.memory_space<vmem>>, %arg2: memref<4x8xf32, #tpu.memory_space<vmem>>, %arg3: memref<4x1xf32, #tpu.memory_space<vmem>>, %arg4: memref<1x4x16x16xf32, #tpu.memory_space<vmem>>) attributes {dimension_semantics = [#tpu.dimension_semantics<parallel>], iteration_bounds = array<i64: 2>, scalar_prefetch = 0 : i64, scratch_operands = 0 : i64, tpu.core_type = #tpu.core_type<tc>, window_params = [{transform_indices = @transform_0, window_bounds = array<i64: 1, 4, 16, 16>}, {pipeline_mode = #tpu.pipeline_mode<synchronous>, transform_indices = @transform_1, window_bounds = array<i64: 4, 8>}, {pipeline_mode = #tpu.pipeline_mode<synchronous>, transform_indices = @transform_2, window_bounds = array<i64: 4, 1>}, {transform_indices = @transform_3, window_bounds = array<i64: 1, 4, 16, 16>}]} {
    %c0 = arith.constant 0 : index
    %c0_0 = arith.constant 0 : index
    %c0_1 = arith.constant 0 : index
    %c0_2 = arith.constant 0 : index
    %0 = vector.load %arg1[%c0, %c0_0, %c0_1, %c0_2] : memref<1x4x16x16xf32, #tpu.memory_space<vmem>>, vector<1x4x16x16xf32>
    %1 = vector.shape_cast %0 : vector<1x4x16x16xf32> to vector<4x16x16xf32>
    %cst = arith.constant dense<0xFF800000> : vector<4x16xf32>
    %2 = vector.multi_reduction <maximumf>, %1, %cst [2] : vector<4x16x16xf32> to vector<4x16xf32>
    %cst_3 = arith.constant dense<0.000000e+00> : vector<4x16xf32>
    %3 = vector.multi_reduction <add>, %1, %cst_3 [2] : vector<4x16x16xf32> to vector<4x16xf32>
    %cst_4 = arith.constant 6.250000e-02 : f32
    %4 = vector.broadcast %cst_4 : f32 to vector<4x16xf32>
    %5 = arith.mulf %3, %4 : vector<4x16xf32>
    %cst_5 = arith.constant dense<0xFF800000> : vector<4x16xf32>
    %6 = vector.multi_reduction <maximumf>, %1, %cst_5 [1] : vector<4x16x16xf32> to vector<4x16xf32>
    %cst_6 = arith.constant dense<0.000000e+00> : vector<4x16xf32>
    %7 = vector.multi_reduction <add>, %1, %cst_6 [1] : vector<4x16x16xf32> to vector<4x16xf32>
    %cst_7 = arith.constant 6.250000e-02 : f32
    %8 = vector.broadcast %cst_7 : f32 to vector<4x16xf32>
    %9 = arith.mulf %7, %8 : vector<4x16xf32>
    %10 = tpu.concatenate %2, %5 in 0 : vector<4x16xf32>, vector<4x16xf32> -> vector<8x16xf32>
    %11 = tpu.concatenate %6, %9 in 0 : vector<4x16xf32>, vector<4x16xf32> -> vector<8x16xf32>
    %c0_8 = arith.constant 0 : index
    %c0_9 = arith.constant 0 : index
    %12 = vector.load %arg2[%c0_8, %c0_9] : memref<4x8xf32, #tpu.memory_space<vmem>>, vector<4x8xf32>
    %c0_10 = arith.constant 0 : index
    %c0_11 = arith.constant 0 : index
    %13 = vector.load %arg3[%c0_10, %c0_11] : memref<4x1xf32, #tpu.memory_space<vmem>>, vector<4x1xf32>
    %cst_12 = arith.constant dense<0.000000e+00> : vector<4x16xf32>
    %14 = tpu.matmul %12, %10, %cst_12 {dimension_numbers = #tpu.dot_dimension_numbers<[1], [0], [0], [1], [0, 0, 1, 1], [], []>, precision = #tpu.contract_precision<fp32>} : vector<4x8xf32>, vector<8x16xf32>, vector<4x16xf32> -> vector<4x16xf32>
    %15 = vector.broadcast %13 : vector<4x1xf32> to vector<4x16xf32>
    %16 = arith.addf %14, %15 : vector<4x16xf32>
    %cst_13 = arith.constant 0.000000e+00 : f32
    %17 = vector.broadcast %cst_13 : f32 to vector<4x16xf32>
    %18 = arith.maximumf %16, %17 : vector<4x16xf32>
    %cst_14 = arith.constant dense<0.000000e+00> : vector<4x16xf32>
    %19 = tpu.matmul %12, %11, %cst_14 {dimension_numbers = #tpu.dot_dimension_numbers<[1], [0], [0], [1], [0, 0, 1, 1], [], []>, precision = #tpu.contract_precision<fp32>} : vector<4x8xf32>, vector<8x16xf32>, vector<4x16xf32> -> vector<4x16xf32>
    %20 = vector.broadcast %13 : vector<4x1xf32> to vector<4x16xf32>
    %21 = arith.addf %19, %20 : vector<4x16xf32>
    %cst_15 = arith.constant 0.000000e+00 : f32
    %22 = vector.broadcast %cst_15 : f32 to vector<4x16xf32>
    %23 = arith.maximumf %21, %22 : vector<4x16xf32>
    %24 = vector.shape_cast %18 : vector<4x16xf32> to vector<4x16x1xf32>
    %25 = vector.shape_cast %23 : vector<4x16xf32> to vector<4x1x16xf32>
    %26 = vector.broadcast %24 : vector<4x16x1xf32> to vector<4x16x16xf32>
    %27 = vector.broadcast %25 : vector<4x1x16xf32> to vector<4x16x16xf32>
    %28 = arith.mulf %26, %27 : vector<4x16x16xf32>
    %cst_16 = arith.constant 5.000000e-01 : f32
    %29 = vector.broadcast %cst_16 : f32 to vector<4x16x16xf32>
    %30 = arith.mulf %29, %28 : vector<4x16x16xf32>
    %31 = math.tanh %30 : vector<4x16x16xf32>
    %cst_17 = arith.constant 5.000000e-01 : f32
    %32 = vector.broadcast %cst_17 : f32 to vector<4x16x16xf32>
    %33 = arith.mulf %32, %31 : vector<4x16x16xf32>
    %cst_18 = arith.constant 5.000000e-01 : f32
    %34 = vector.broadcast %cst_18 : f32 to vector<4x16x16xf32>
    %35 = arith.addf %33, %34 : vector<4x16x16xf32>
    %c0_19 = arith.constant 0 : index
    %c0_20 = arith.constant 0 : index
    %c0_21 = arith.constant 0 : index
    %c0_22 = arith.constant 0 : index
    %36 = vector.load %arg1[%c0_19, %c0_20, %c0_21, %c0_22] : memref<1x4x16x16xf32, #tpu.memory_space<vmem>>, vector<1x4x16x16xf32>
    %37 = vector.shape_cast %36 : vector<1x4x16x16xf32> to vector<4x16x16xf32>
    %38 = arith.mulf %35, %37 : vector<4x16x16xf32>
    %c0_23 = arith.constant 0 : index
    %c0_24 = arith.constant 0 : index
    %c0_25 = arith.constant 0 : index
    %c0_26 = arith.constant 0 : index
    %39 = vector.load %arg4[%c0_23, %c0_24, %c0_25, %c0_26] : memref<1x4x16x16xf32, #tpu.memory_space<vmem>>, vector<1x4x16x16xf32>
    %40 = vector.shape_cast %39 : vector<1x4x16x16xf32> to vector<4x16x16xf32>
    %41 = vector.shape_cast %38 : vector<4x16x16xf32> to vector<1x4x16x16xf32>
    tpu.vector_store %arg4[%c0_23, %c0_24, %c0_25, %c0_26], %41 {strides = array<i32>} : memref<1x4x16x16xf32, #tpu.memory_space<vmem>>, vector<1x4x16x16xf32>,
    return
  }
  func.func @transform_0(%arg0: i32) -> (i32, i32, i32, i32) {
    %c0_i32 = arith.constant 0 : i32
    %c0_i32_0 = arith.constant 0 : i32
    %c0_i32_1 = arith.constant 0 : i32
    %c0_i32_2 = arith.constant 0 : i32
    return %arg0, %c0_i32, %c0_i32_0, %c0_i32_1 : i32, i32, i32, i32
  }
  func.func @transform_1(%arg0: i32) -> (i32, i32) {
    %c0_i32 = arith.constant 0 : i32
    %c0_i32_0 = arith.constant 0 : i32
    %c0_i32_1 = arith.constant 0 : i32
    return %c0_i32, %c0_i32_0 : i32, i32
  }
  func.func @transform_2(%arg0: i32) -> (i32, i32) {
    %c0_i32 = arith.constant 0 : i32
    %c0_i32_0 = arith.constant 0 : i32
    %c0_i32_1 = arith.constant 0 : i32
    return %c0_i32, %c0_i32_0 : i32, i32
  }
  func.func @transform_3(%arg0: i32) -> (i32, i32, i32, i32) {
    %c0_i32 = arith.constant 0 : i32
    %c0_i32_0 = arith.constant 0 : i32
    %c0_i32_1 = arith.constant 0 : i32
    %c0_i32_2 = arith.constant 0 : i32
    return %arg0, %c0_i32, %c0_i32_0, %c0_i32_1 : i32, i32, i32, i32
  }
}

</mosaic_0001>

<bundles_post_ra>
// kernel: sfca_forward.1
= control target key start
LH: loop header
LB: loop body
LE: loop exit
PB: predicated region body
PF: predicated region fallthrough
CT: control target
= control target key end

     0   :  { %8 = vsyncpa [#allocation3], 0  ;;  %s2242_s0 = inlined_call_operand.hbm [shape: f32[2,4,16,16], index: 0, kind: input, shape index: {}]   ;;  %s2243_s1 = inlined_call_operand.vmem [shape: f32[4,8], index: 1, kind: input, shape index: {}]   ;;  %s2244_s2 = inlined_call_operand.vmem [shape: f32[4,1], index: 2, kind: input, shape index: {}]   ;;  %s2245_s3 = inlined_call_operand.hbm [shape: f32[2,4,16,16], index: 3, kind: output, shape index: {}]  }
   0x1   :  { %10 = vsyncpa [#allocation3 + $0x1], 0 }
   0x2   :  { %11 = vsyncpa [#allocation4], 0 }
   0x3   :  { %13 = vsyncpa [#allocation4 + $0x1], 0  ;;  %s1897_s12 = smov 0   ;;  %s1899_s13 = smov 0  }
   0x4   :  { %s1901_s14 = smov 0   ;;  %s1903_s15 = smov 0  }
   0x5 LB: > { %s1918_s16 = sadd.s32 4294967295, %s1865_s15   ;;  %s1576_s17 = sadd.s32 4294967294, %s1865_s15   ;;  %s1865_s15 = sphi %s1903_s15, %s2258_s15   ;;  %s1861_s14 = sphi %s1901_s14, %s2257_s14   ;;  %s1857_s13 = sphi %s1899_s13, %s2256_s13   ;;  %s1853_s12 = sphi %s1897_s12, %s2255_s12  }
   0x6   : > { %s1922_s18 = sadd.s32 1, %s1865_s15   ;;  %s26_s19 = sadd.s32 1, %s1861_s14 }
   0x7   : > { %s23_s20 = ssub.s32 %s1865_s15, %s1922_s18  ;;  %p33_p0 = scmp.ne.s32.totalorder %s1861_s14, %s1857_s13 }
   0x8   : > { %p24_p1 = scmp.eq.s32.totalorder %s23_s20, 0  ;;  %p34_p2 = scmp.eq.s32.totalorder %s1865_s15, 0 }
   0x9   : > { %p39_p3 = scmp.ne.s32.totalorder %s1857_s13, %s1853_s12  ;;  %p40_p4 = scmp.eq.s32.totalorder %s1918_s16, 0 }
   0xa   : > { %s1934_s21 = scalar_select %p24_p1, %s1861_s14, %s26_s19  }
   0xb   : > { %p1936_p5 = por %p34_p2, %p33_p0  ;;  %p1940_p6 = por %p40_p4, %p39_p3 }
   0xc   : > { %p105_p7 = scmp.eq.s32.totalorder %s1918_s16, 1  ;;  %p111_p8 = scmp.eq.s32.totalorder %s1576_s17, 1 }
   0xd   : > { %p1710_p10 = scmp.lt.s32.totalorder %s1865_s15, 2  ;;  %s137_s26 = sand.u32 1, %s1861_s14  }
   0xe   : > { %p1947_p11 = por %p105_p7, %p33_p0  ;;  %p1951_p12 = por %p111_p8, %p39_p3 }
   0xf   : > { %s1590_s27 = sshll.u32 %s1865_s15, 10  ;;  %s1579_s28 = sshll.u32 %s137_s26, 6 }
  0x10   : > { %s2249_s24 = scalar_select %p1947_p11, 1, 0 }
  0x11   : > { %s2250_s25 = scalar_select %p1951_p12, 1, 0 }
  0x12   : > { %s1960_s4 = scalar_lea.hbm %s2242_s0, %s1590_s27  ;;  %s141_s5 = scalar_lea.vmem [#allocation2], %s1579_s28 }
  0x13   : > { %s148_s6 = sshll.u32 %s141_s5, 4  ;;  %p1964_p13 = pnand %p1710_p10, %p1936_p5  ;;  %s1968_s6 = int_to_ptr.vmem [resolvable:$true] %s148_s6 }
  0x14   : > { %s1970_s8 = scalar_lea.sflag [#allocation3], %s137_s26  ;;  %s1769_s9 = scalar_lea.hbm %s1960_s4, 1024 }
  0x15   : > { %p1770_p0 = scmp.ne.s32.totalorder %s1960_s4, %s1769_s9  ;;  %p1771_p1 = pneg %p1964_p13 }
  0x16   : > { %s1774_s17 = scalar_lea.hbm %s2242_s0, 2048  ;;  %p1775_p4 = scmp.lt.u32.totalorder %s1960_s4, %s2242_s0 }
  0x17   : > { %p1772_p2 = pnand %p1771_p1, %p1770_p0  ;;  %p1776_p5 = scmp.lt.u32.totalorder %s1774_s17, %s1769_s9 }
  0x18   : > { %p1778_p8 = scmp.lt.u32.totalorder %s1769_s9, %s1960_s4 }
  0x19   : > { %p1773_p3 = pneg %p1772_p2  ;;  %p1777_p7 = por %p1776_p5, %p1775_p4 }
  0x1b   : > { %p1779_p10 = por %p1778_p8, %p1777_p7 }
  0x1d   : > { %p1780_p9 = pnand %p1779_p10, %p1773_p3 }
  0x1f   : > { %1783 = shalt.err (!%p1780_p9)
}
  0x20   : > { %s1784_s22 = scalar_lea.vmem %s1968_s6, 1024  ;;  %s1867_s26 = smov [#allocation2]  }
  0x21   : > { %p1785_p0 = scmp.ne.s32.totalorder %s1968_s6, %s1784_s22  ;;  %s1789_s27 = sshll.u32 %s1867_s26, 4  ;;  %s1790_s27 = int_to_ptr.vmem [resolvable:$false] %s1789_s27 }
  0x22   : > { %s1791_s28 = scalar_lea.vmem %s1790_s27, 2048  ;;  %p1792_p11 = scmp.lt.s32.totalorder %s1968_s6, %s1790_s27 }
  0x23   : > { %p1787_p2 = pnand %p1785_p0, %p1771_p1  ;;  %p1793_p4 = scmp.lt.s32.totalorder %s1791_s28, %s1784_s22 }
  0x25   : > { %p1788_p12 = pneg %p1787_p2  ;;  %p1794_p5 = por %p1793_p4, %p1792_p11 }
  0x27   : > { %p1795_p7 = pnand %p1794_p5, %p1788_p12 }
  0x29   : > { %1798 = shalt.err (!%p1795_p7)
}
  0x2a   : > { %s1868_s29 = smov 128   ;;  %s1869_s30 = smov 8  }
  0x2b   : > { %1705 = dma.hbm_to_vmem [thread:$0]  (!%p1964_p13), %s1960_s4, 1024, %s1968_s6, %s1970_s8, %s1868_s29, %s1868_s29, %s1869_s30  }
  0x2c   : > { %p1582_p9 = scmp.ge.s32.totalorder %s1865_s15, 1  ;;  %p156_p1 = scmp.lt.s32.totalorder %s1865_s15, 3 }
  0x2e   : > { %p157_p3 = pnand %p1582_p9, %p156_p1 }
  0x2f   : > { %s2001_s5 = sand.u32 (!%p157_p3), 1, %s1857_s13  }
  0x30   : > { %160 = sbr.rel (%p157_p3) target bundleno = 673 (0x2a1), region = 32  ;;  %s1583_s9 = sshll.u32 (!%p157_p3), %s2001_s5, 6 }
  0x31   : > { %s163_s10 = scalar_lea.sflag (!%p157_p3), [#allocation3], %s2001_s5  ;;  %s166_s11 = scalar_lea.vmem (!%p157_p3), [#allocation2], %s1583_s9 }
  0x37   : > { %1844 = dma.done.wait (%p1940_p6), %s163_s10, 1024  }
  0x38   : > { %1846 = vsyncadd (%p1940_p6), %s163_s10, 4294966272  ;;  %vm197_vm0 = vcmask 130048   ;;  %v2011_v0 = vld [vmem:[%s166_s11 + $0x10] sm:$0xff]  ;;  %v2013_v1 = vld [vmem:[%s166_s11] sm:$0xff]  ;;  %vm362_vm1 = vcmask 1041409   ;;  %vm446_vm2 = vcmask 64512  }
  0x39   : > { %v2015_v2 = vld [vmem:[%s166_s11 + $0x18] sm:$0xff]  ;;  %v228_v3 = vsel %vm197_vm0, %v2011_v0, 0.0  ;;  %v222_v4 = vsel %vm197_vm0, %v2013_v1, 0.0  ;;  %v2021_v5 = vld [vmem:[%s166_s11 + $0x8] sm:$0xff]  ;;  %v2029_v9 = vld [vmem:[%s166_s11 + $0x20] sm:$0xff]  ;;  %v198_v15 = vsel %vm197_vm0, %v2013_v1, -inf }
  0x3a   : > { %229 = vadd.xlane.f32.xlu1 %v228_v3  ;;  %223 = vadd.xlane.f32.xlu0 %v222_v4  ;;  %v231_v6 = vsel %vm197_vm0, %v2015_v2, 0.0  ;;  %v225_v7 = vsel %vm197_vm0, %v2021_v5, 0.0  ;;  %v2027_v8 = vld [vmem:[%s166_s11 + $0x28] sm:$0xff]  ;;  %v234_v11 = vsel %vm197_vm0, %v2029_v9, 0.0  ;;  %v201_v14 = vsel %vm197_vm0, %v2021_v5, -inf  ;;  %v2039_v16 = vld [vmem:[%s166_s11 + $0x38] sm:$0xff] }
  0x3b   : > { %v237_v10 = vsel %vm197_vm0, %v2027_v8, 0.0  ;;  %v289_v12 = vadd.f32 %v231_v6, %v228_v3  ;;  %v282_v13 = vadd.f32 %v225_v7, %v222_v4  ;;  %v2041_v17 = vld [vmem:[%s166_s11 + $0x30] sm:$0xff]  ;;  %v207_v18 = vsel %vm197_vm0, %v2015_v2, -inf  ;;  %s2165_s8 = scalar_lea.vmem [#allocation5], %s1583_s9  ;;  %s1591_s17 = sshll.u32 %s1918_s16, 10 }
  0x3c   : > { %v204_v19 = vsel %vm197_vm0, %v2011_v0, -inf  ;;  %v254_v20 = vmax.f32 %v198_v15, %v201_v14  ;;  %v296_v23 = vadd.f32 %v237_v10, %v234_v11  ;;  %v243_v24 = vsel %vm197_vm0, %v2039_v16, 0.0  ;;  %s1503_s19 = sshll.u32 %s2165_s8, 4  ;;  %s2193_s26 = scalar_lea.hbm %s2245_s3, %s1591_s17  ;;  %s2195_s19 = int_to_ptr.vmem [resolvable:$true] %s1503_s19 }
  0x3d   : > { %v261_v21 = vmax.f32 %v204_v19, %v207_v18  ;;  %v290_v22 = vrot.slane %v289_v12, 4  ;;  %v240_v25 = vsel %vm197_vm0, %v2041_v17, 0.0  ;;  %v283_v26 = vrot.slane %v282_v13, 4  ;;  %s1490_s27 = scalar_lea.sflag [#allocation4], %s2001_s5  ;;  %s1799_s16 = scalar_lea.vmem %s2195_s19, 1024 }
  0x3e   : > { %232 = vadd.xlane.f32.xlu1 %v231_v6  ;;  %226 = vadd.xlane.f32.xlu0 %v225_v7  ;;  %v303_v27 = vadd.f32 %v243_v24, %v240_v25  ;;  %v213_v28 = vsel %vm197_vm0, %v2027_v8, -inf  ;;  %v210_v29 = vsel %vm197_vm0, %v2029_v9, -inf  ;;  %v255_v31 = vrot.slane %v254_v20, 4  ;;  %p1800_p6 = scmp.ne.s32.totalorder %s2195_s19, %s1799_s16  ;;  %p2252_p11 = scmp.ne.s32.totalorder %s2249_s24, 0 }
  0x3f   : > { %v268_v30 = vmax.f32 %v210_v29, %v213_v28  ;;  %v262_v32 = vrot.slane %v261_v21, 4  ;;  %v297_v33 = vrot.slane %v296_v23, 4  ;;  %v219_v34 = vsel %vm197_vm0, %v2039_v16, -inf  ;;  %s1874_s28 = smov [#allocation5]  }
  0x40   : > { %v216_v35 = vsel %vm197_vm0, %v2041_v17, -inf  ;;  %v291_v36 = vadd.f32 %v290_v22, %v289_v12  ;;  %v284_v37 = vadd.f32 %v283_v26, %v282_v13  ;;  %v304_v38 = vrot.slane %v303_v27, 4  ;;  %p1801_p12 = pnand %p1800_p6, %p2252_p11  ;;  %s1803_s29 = sshll.u32 %s1874_s28, 4  ;;  %s1804_s29 = int_to_ptr.vmem [resolvable:$false] %s1803_s29 }
  0x41   : > { %v275_v39 = vmax.f32 %v216_v35, %v219_v34  ;;  %v269_v40 = vrot.slane %v268_v30, 4  ;;  %v256_v41 = vmax.f32 %v254_v20, %v255_v31  ;;  %v263_v42 = vmax.f32 %v261_v21, %v262_v32  ;;  %s1805_s30 = scalar_lea.vmem %s1804_s29, 2048  ;;  %p1806_p8 = scmp.lt.s32.totalorder %s2195_s19, %s1804_s29 }
  0x42   : > { %238 = vadd.xlane.f32.xlu1 %v237_v10  ;;  %235 = vadd.xlane.f32.xlu0 %v234_v11  ;;  %v298_v43 = vadd.f32 %v297_v33, %v296_v23  ;;  %v292_v44 = vrot.slane %v291_v36, 2  ;;  %v285_v45 = vrot.slane %v284_v37, 2  ;;  %v305_v46 = vadd.f32 %v304_v38, %v303_v27  ;;  %p1802_p13 = pneg %p1801_p12  ;;  %p1807_p10 = scmp.lt.s32.totalorder %s1805_s30, %s1799_s16 }
  0x43   : > { %v276_v47 = vrot.slane %v275_v39, 4  ;;  %v270_v48 = vmax.f32 %v268_v30, %v269_v40  ;;  %v257_v49 = vrot.slane %v256_v41, 2  ;;  %v264_v50 = vrot.slane %v263_v42, 2 }
  0x44   : > { %v299_v51 = vrot.slane %v298_v43, 2  ;;  %v293_v52 = vadd.f32 %v292_v44, %v291_v36  ;;  %v286_v53 = vadd.f32 %v285_v45, %v284_v37  ;;  %v306_v54 = vrot.slane %v305_v46, 2  ;;  %p1808_p0 = por %p1807_p10, %p1806_p8 }
  0x45   : > { %v277_v55 = vmax.f32 %v275_v39, %v276_v47  ;;  %v271_v56 = vrot.slane %v270_v48, 2  ;;  %v258_v57 = vmax.f32 %v256_v41, %v257_v49  ;;  %v265_v58 = vmax.f32 %v263_v42, %v264_v50 }
  0x46   : > { %202 = vmax.xlane.f32.xlu1 %v201_v14  ;;  %199 = vmax.xlane.f32.xlu0 %v198_v15  ;;  %v300_v59 = vadd.f32 %v299_v51, %v298_v43  ;;  %v294_v60 = vrot.slane %v293_v52, 1  ;;  %v287_v61 = vrot.slane %v286_v53, 1  ;;  %v307_v62 = vadd.f32 %v306_v54, %v305_v46  ;;  %p1809_p2 = pnand %p1808_p0, %p1802_p13 }
  0x47   : > { %v278_v63 = vrot.slane %v277_v55, 2  ;;  %v272_v3 = vmax.f32 %v270_v48, %v271_v56  ;;  %v259_v4 = vrot.slane %v258_v57, 1  ;;  %v266_v6 = vrot.slane %v265_v58, 1  ;;  %v440_v48 = vld [vmem:[%s2244_s2] sm:$0xf] }
  0x48   : > { %v301_v7 = vrot.slane %v300_v59, 1  ;;  %v295_v10 = vadd.f32 %v294_v60, %v293_v52  ;;  %v288_v11 = vadd.f32 %v287_v61, %v286_v53  ;;  %v308_v12 = vrot.slane %v307_v62, 1 }
  0x49   : > { %v279_v13 = vmax.f32 %v277_v55, %v278_v63  ;;  %v273_v14 = vrot.slane %v272_v3, 1  ;;  %v260_v15 = vmax.f32 %v258_v57, %v259_v4  ;;  %vm413_vm3 = vcmask 1045509  }
  0x4a   : > { %208 = vmax.xlane.f32.xlu1 %v207_v18  ;;  %205 = vmax.xlane.f32.xlu0 %v204_v19  ;;  %v267_v18 = vmax.f32 %v265_v58, %v266_v6  ;;  %v302_v19 = vadd.f32 %v301_v7, %v300_v59  ;;  %v311_v20 = vmul.f32 0.0625, %v295_v10  ;;  %v310_v21 = vmul.f32 0.0625, %v288_v11 }
  0x4b   : > { %v309_v22 = vadd.f32 %v308_v12, %v307_v62  ;;  %v280_v23 = vrot.slane %v279_v13, 1  ;;  %vm364_vm4 = vcmask 1042434   ;;  %vm366_vm5 = vcmask 1043459  }
  0x4c   : > { %v426_v26 = vsel %vm362_vm1, %v267_v18, %v260_v15  ;;  %v434_v32 = vsel %vm413_vm3, %v311_v20, %v310_v21  ;;  %vm415_vm6 = vcmask 1046534   ;;  %vm417_vm7 = vcmask 1047559  }
  0x4d   : > { %v313_v30 = vmul.f32 0.0625, %v309_v22  ;;  %v281_v31 = vmax.f32 %v279_v13, %v280_v23  ;;  %vm420_vm8 = vcmask 1043456   ;;  %v1870_v39 = vmov 0.0  }
  0x4e   : > { %244 = vadd.xlane.f32.xlu1 %v243_v24  ;;  %241 = vadd.xlane.f32.xlu0 %v240_v25  ;;  %v274_v24 = vmax.f32 %v272_v3, %v273_v14  ;;  %v439_v25 = vld [vmem:[%s2243_s1] sm:$0xf]  ;;  %vm1871_vm9 = vmmov 0   ;;  %v1872_v49 = vmov 0   ;;  %v322_v56 = vlaneseq }
  0x4f   : > { %v448_v27 = vsel %vm446_vm2, %v439_v25, 0  ;;  %1616 = vmatprep.subr.mxu0 %v1870_v39  ;;  %1646 = vmatprep.subr.mxu1 %v1870_v39  ;;  %vm333_vm10 = vcmask 130112  }
  0x50   : > { %v427_v33 = vsel %vm364_vm4, %v274_v24, %v426_v26  ;;  %1618 = vmatprep.mubr.msk.f32.mxu0 %vm1871_vm9, %v1870_v39  ;;  %1648 = vmatprep.mubr.msk.f32.mxu1 %vm1871_vm9, %v1870_v39  ;;  %v323_v59 = vand.u32 127, %v322_v56  ;;  %v2111_v60 = vshrl.u32 %v322_v56, 7 }
  0x51   : > { %v428_v37 = vsel %vm366_vm5, %v281_v31, %v427_v33  ;;  %1752 = vset.pattern.permute.xlu0 %v1872_v49 }
  0x52   : > { %214 = vmax.xlane.f32.xlu1 %v213_v28  ;;  %211 = vmax.xlane.f32.xlu0 %v210_v29  ;;  %v312_v28 = vmul.f32 0.0625, %v302_v19  ;;  %v2063_v29 = vand.u32 4294901760, %v448_v27  ;;  %v328_v61 = vadd.s32 4294967288, %v323_v59  ;;  %v326_v3 = vsub.s32 %v323_v59, %v2111_v60 }
  0x54   : > { %v435_v36 = vsel %vm415_vm6, %v312_v28, %v434_v32  ;;  %v331_v7 = vsub.s32 %v328_v61, %v2111_v60 }
  0x55   : > { %v436_v38 = vsel %vm417_vm7, %v313_v30, %v435_v36 }
  0x56   : > { %220 = vmax.xlane.f32.xlu1 %v219_v34  ;;  %217 = vmax.xlane.f32.xlu0 %v216_v35  ;;  %v2068_v34 = vsub.f32 %v448_v27, %v2063_v29  ;;  %v438_v41 = vsel %vm420_vm8, %v428_v37, %v436_v38 }
  0x57   : > { %v898_v42 = vand.u32 4294901760, %v438_v41 }
  0x58   : > { %v2071_v35 = vand.u32 4294901760, %v2068_v34 }
  0x59   : > { %1647 = vmatpush3.msra.mxu1 %v898_v42  ;;  %v975_v44 = vsub.f32 %v438_v41, %v898_v42 }
  0x5a   : > { %v519_v40 = vsub.f32 %v2068_v34, %v2071_v35  ;;  %1651 = vmatprep.subr.mxu1 %v1870_v39 }
  0x5b   : > { %v976_v45 = vand.u32 4294901760, %v975_v44 }
  0x5c   : > { %v2081_v43 = vand.u32 4294901760, %v519_v40 }
  0x5d   : > { %v977_v46 = vsub.f32 %v975_v44, %v976_v45 }
  0x5e   : > { %1649 = vmatmul.mubr.f32.vlgmr.msra.gmra.mrb[0].mxu1 %v2081_v43 }
  0x5f   : > { %1653 = vmatprep.mubr.msk.f32.mxu1 %vm1871_vm9, %v1870_v39  ;;  %v978_v47 = vand.u32 4294901760, %v977_v46 }
  0x61   : > { %1652 = vmatpush3.msra.mxu1 %v978_v47 }
  0x62   : > { %1656 = vmatprep.subr.mxu1 %v1870_v39 }
  0x66   : > { %1654 = vmatmul.mubr.f32.vlgmr.msra.gmra.mrb[0].mxu1 %v2063_v29 }
  0x67   : > { %1657 = vmatpush3.msra.mxu1 %v975_v44  ;;  %1658 = vmatprep.mubr.msk.f32.mxu1 %vm1871_vm9, %v1870_v39 }
  0x68   : > { %1661 = vmatprep.subr.mxu1 %v1870_v39 }
  0x6c   : > { %443 = vperm.xlu0 %1752, %v440_v48  }
  0x6e   : > { %1659 = vmatmul.mubr.f32.vlgmr.msra.gmra.mrb[0].mxu1 %v2068_v34 }
  0x6f   : > { %1662 = vmatpush3.msra.mxu1 %v898_v42  ;;  %1663 = vmatprep.mubr.msk.f32.mxu1 %vm1871_vm9, %v1870_v39 }
  0x70   : > { %1666 = vmatprep.subr.mxu1 %v1870_v39 }
  0x76   : > { %1664 = vmatmul.mubr.f32.vlgmr.msra.gmra.mrb[0].mxu1 %v2071_v35 }
  0x77   : > { %1667 = vmatpush3.msra.mxu1 %v976_v45  ;;  %1668 = vmatprep.mubr.msk.f32.mxu1 %vm1871_vm9, %v1870_v39 }
  0x78   : > { %1671 = vmatprep.subr.mxu1 %v1870_v39 }
  0x7e   : > { %1669 = vmatmul.mubr.f32.vlgmr.msra.gmra.mrb[0].mxu1 %v2063_v29 }
  0x7f   : > { %1672 = vmatpush3.msra.mxu1 %v898_v42  ;;  %1673 = vmatprep.mubr.msk.f32.mxu1 %vm1871_vm9, %v1870_v39 }
  0x86   : > { %1674 = vmatmul.mubr.f32.vlgmr.msra.gmra.mrb[0].mxu1 %v2063_v29 }
  0xc7   : > { %v230_v50 = vpop.xlane.xlu1 %229  ;;  %v224_v51 = vpop.xlane.xlu0 %223 }
  0xc8   : > { %v248_v4 = vmul.f32 0.0625, %v230_v50  ;;  %v246_v6 = vmul.f32 0.0625, %v224_v51 }
  0xca   : > { %v389_v20 = vrot.slane %v248_v4, %v326_v3  ;;  %v380_v21 = vrot.slane %v246_v6, %v326_v3 }
  0xcb   : > { %v233_v52 = vpop.xlane.xlu1 %232  ;;  %v227_v53 = vpop.xlane.xlu0 %226 }
  0xcc   : > { %v249_v10 = vmul.f32 0.0625, %v233_v52  ;;  %v247_v11 = vmul.f32 0.0625, %v227_v53 }
  0xce   : > { %v393_v22 = vrot.slane %v249_v10, %v331_v7  ;;  %v384_v23 = vrot.slane %v247_v11, %v331_v7  ;;  %v2152_v11 = vsub.s32 0, %v2111_v60 }
  0xcf   : > { %v239_v54 = vpop.xlane.xlu1 %238  ;;  %v236_v55 = vpop.xlane.xlu0 %235 }
  0xd0   : > { %v251_v12 = vmul.f32 0.0625, %v239_v54  ;;  %v250_v13 = vmul.f32 0.0625, %v236_v55  ;;  %v394_v40 = vsel %vm333_vm10, %v393_v22, %v389_v20  ;;  %v385_v41 = vsel %vm333_vm10, %v384_v23, %v380_v21 }
  0xd1   : > { %v414_v52 = vsel %vm413_vm3, %v394_v40, %v385_v41  ;;  %v1873_v20 = vmov 1966171168  }
  0xd2   : > { %v402_v26 = vrot.slane %v251_v12, %v331_v7  ;;  %v398_v27 = vrot.slane %v250_v13, %v326_v3  ;;  %v1390_v21 = vunpack.c.l.s4 %v1873_v20 }
  0xd3   : > { %v203_v57 = vpop.xlane.xlu1 %202  ;;  %v200_v58 = vpop.xlane.xlu0 %199 }
  0xd4   : > { %v332_v28 = vrot.slane %v203_v57, %v331_v7  ;;  %v327_v30 = vrot.slane %v200_v58, %v326_v3  ;;  %v403_v44 = vsel %vm333_vm10, %v402_v26, %v398_v27  ;;  %v1391_v23 = vunpack.c.0.s8 %v1390_v21 }
  0xd5   : > { %v416_v54 = vsel %vm415_vm6, %v403_v44, %v414_v52 }
  0xd6   : > { %v334_v48 = vsel %vm333_vm10, %v332_v28, %v327_v30 }
  0xd7   : > { %v209_v62 = vpop.xlane.xlu1 %208  ;;  %v206_v63 = vpop.xlane.xlu0 %205 }
  0xd8   : > { %v342_v24 = vrot.slane %v209_v62, %v331_v7  ;;  %v338_v25 = vrot.slane %v206_v63, %v326_v3 }
  0xda   : > { %v343_v42 = vsel %vm333_vm10, %v342_v24, %v338_v25  ;;  %v1394_v25 = vsub.s32 %v1391_v23, %v2111_v60 }
  0xdb   : > { %v245_v14 = vpop.xlane.xlu1 %244  ;;  %v242_v15 = vpop.xlane.xlu0 %241  ;;  %v363_v53 = vsel %vm362_vm1, %v343_v42, %v334_v48 }
  0xdc   : > { %v253_v18 = vmul.f32 0.0625, %v245_v14  ;;  %v252_v19 = vmul.f32 0.0625, %v242_v15  ;;  %v1357_v14 = vsub.s32 1, %v2111_v60 }
  0xde   : > { %v411_v33 = vrot.slane %v253_v18, %v331_v7  ;;  %v407_v36 = vrot.slane %v252_v19, %v326_v3  ;;  %v1379_v18 = vsub.s32 3, %v2111_v60 }
  0xdf   : > { %v215_v31 = vpop.xlane.xlu1 %214  ;;  %v212_v32 = vpop.xlane.xlu0 %211 }
  0xe0   : > { %v351_v37 = vrot.slane %v215_v31, %v331_v7  ;;  %v347_v38 = vrot.slane %v212_v32, %v326_v3  ;;  %v412_v49 = vsel %vm333_vm10, %v411_v33, %v407_v36 }
  0xe1   : > { %v418_v57 = vsel %vm417_vm7, %v412_v49, %v416_v54 }
  0xe2   : > { %v352_v45 = vsel %vm333_vm10, %v351_v37, %v347_v38 }
  0xe3   : > { %v221_v46 = vpop.xlane.xlu1 %220  ;;  %v218_v47 = vpop.xlane.xlu0 %217  ;;  %v365_v55 = vsel %vm364_vm4, %v352_v45, %v363_v53 }
  0xe4   : > { %v360_v50 = vrot.slane %v221_v46, %v331_v7  ;;  %v356_v51 = vrot.slane %v218_v47, %v326_v3 }
  0xe6   : > { %v361_v56 = vsel %vm333_vm10, %v360_v50, %v356_v51 }
  0xe7   : > { %v367_v58 = vsel %vm366_vm5, %v361_v56, %v365_v55 }
  0xe8   : > { %v421_v59 = vsel %vm420_vm8, %v367_v58, %v418_v57 }
  0xe9   : > { %v451_v61 = vand.u32 4294901760, %v421_v59 }
  0xeb   : > { %1617 = vmatpush3.msra.mxu0 %v451_v61  ;;  %v528_v62 = vsub.f32 %v421_v59, %v451_v61  ;;  %v444_v6 = vpop.permute.xlu0 %443 }
  0xec   : > { %1619 = vmatmul.mubr.f32.vlgmr.msra.gmra.mrb[0].mxu0 %v2081_v43  ;;  %1621 = vmatprep.subr.mxu0 %v1870_v39 }
  0xed   : > { %v529_v63 = vand.u32 4294901760, %v528_v62  ;;  %1623 = vmatprep.mubr.msk.f32.mxu0 %vm1871_vm9, %v1870_v39 }
  0xef   : > { %v530_v3 = vsub.f32 %v528_v62, %v529_v63 }
  0xf1   : > { %v531_v4 = vand.u32 4294901760, %v530_v3 }
  0xf3   : > { %1622 = vmatpush3.msra.mxu0 %v531_v4 }
  0xf4   : > { %1624 = vmatmul.mubr.f32.vlgmr.msra.gmra.mrb[0].mxu0 %v2063_v29  ;;  %1626 = vmatprep.subr.mxu0 %v1870_v39 }
  0xf5   : > { %1627 = vmatpush3.msra.mxu0 %v528_v62  ;;  %1628 = vmatprep.mubr.msk.f32.mxu0 %vm1871_vm9, %v1870_v39 }
  0xf6   : > { %1631 = vmatprep.subr.mxu0 %v1870_v39 }
  0xfc   : > { %1629 = vmatmul.mubr.f32.vlgmr.msra.gmra.mrb[0].mxu0 %v2068_v34 }
  0xfd   : > { %1632 = vmatpush3.msra.mxu0 %v451_v61  ;;  %1633 = vmatprep.mubr.msk.f32.mxu0 %vm1871_vm9, %v1870_v39 }
  0xfe   : > { %1636 = vmatprep.subr.mxu0 %v1870_v39 }
 0x104   : > { %1634 = vmatmul.mubr.f32.vlgmr.msra.gmra.mrb[0].mxu0 %v2071_v35 }
 0x105   : > { %1637 = vmatpush3.msra.mxu0 %v529_v63  ;;  %1638 = vmatprep.mubr.msk.f32.mxu0 %vm1871_vm9, %v1870_v39 }
 0x106   : > { %1641 = vmatprep.subr.mxu0 %v1870_v39 }
 0x10c   : > { %1639 = vmatmul.mubr.f32.vlgmr.msra.gmra.mrb[0].mxu0 %v2063_v29 }
 0x10d   : > { %1642 = vmatpush3.msra.mxu0 %v451_v61  ;;  %1643 = vmatprep.mubr.msk.f32.mxu0 %vm1871_vm9, %v1870_v39 }
 0x114   : > { %1644 = vmatmul.mubr.f32.vlgmr.msra.gmra.mrb[0].mxu0 %v2063_v29  ;;  %v1368_v29 = vsub.s32 2, %v2111_v60 }
 0x159   : > { %v1339_v34 = vpop.f32.mrb[0].mxu1 }
 0x15a   : > { %v1675_v43 = vpop.f32.mrb[1].mxu1  ;;  %v1677_v22 = vadd.f32 %v1339_v34, %v444_v6 }
 0x15c   : > { %v1343_v24 = vmax.f32 %v1677_v22, 0.0 }
 0x15e   : > { %v1395_v26 = vrot.slane %v1343_v24, %v1394_v25 }
 0x160   : > { %v1403_v27 = vrot.slane %v1395_v26, %v1394_v25  ;;  %v1396_v28 = vcombine.high %v1395_v26, %v1395_v26 }
 0x162   : > { %v1416_v30 = vrot.slane %v1403_v27, %v2152_v11  ;;  %v1410_v36 = vrot.slane %v1396_v28, %v1394_v25  ;;  %v1411_v60 = vcombine.high %v1403_v27, %v1403_v27 }
 0x164   : > { %v1420_v41 = vrot.slane %v1410_v36, %v2152_v11  ;;  %v1424_v50 = vrot.slane %v1411_v60, %v2152_v11  ;;  %v1412_v57 = vcombine.high %v1410_v36, %v1410_v36 }
 0x166   : > { %v1428_v34 = vrot.slane %v1412_v57, %v2152_v11 }
 0x1e7   : > { %v892_v7 = vpop.f32.mrb[0].mxu0 }
 0x1e8   : > { %v1676_v10 = vadd.f32 %v892_v7, %v444_v6  ;;  %v1645_v35 = vpop.f32.mrb[1].mxu0 }
 0x1ea   : > { %v896_v12 = vmax.f32 %v1676_v10, 0.0 }
 0x1ec   : > { %v1347_v13 = vrot.slane %v896_v12, %v2152_v11  ;;  %v1358_v15 = vrot.slane %v896_v12, %v1357_v14  ;;  %v1369_v39 = vrot.slane %v896_v12, %v1368_v29  ;;  %v1380_v19 = vrot.slane %v896_v12, %v1379_v18 }
 0x1ee   : > { %1349 = vbcast.lane.b32.xlu1 %v1347_v13, 256 }
 0x1f2   : > { %1353 = vbcast.lane.b32.xlu1 %v1347_v13, 264 }
 0x1f6   : > { %1360 = vbcast.lane.b32.xlu1 %v1358_v15, 256 }
 0x1fa   : > { %1364 = vbcast.lane.b32.xlu1 %v1358_v15, 264 }
 0x1fe   : > { %1371 = vbcast.lane.b32.xlu1 %v1369_v39, 256 }
 0x202   : > { %1375 = vbcast.lane.b32.xlu1 %v1369_v39, 264 }
 0x206   : > { %1382 = vbcast.lane.b32.xlu1 %v1380_v19, 256 }
 0x20a   : > { %1386 = vbcast.lane.b32.xlu1 %v1380_v19, 264 }
 0x260   : > { %v1350_v31 = vpop.permute.xlu1 %1349 }
 0x261   : > { %v1433_v32 = vmul.f32 %v1416_v30, %v1350_v31 }
 0x263   : > { %v1441_v33 = vmul.f32 0.5, %v1433_v32 }
 0x264   : > { %v1354_v37 = vpop.permute.xlu1 %1353 }
 0x265   : > { %1753 = vtanh.f32 %v1441_v33  ;;  %v1434_v38 = vmul.f32 %v1416_v30, %v1354_v37 }
 0x267   : > { %v1442_v40 = vmul.f32 0.5, %v1434_v38 }
 0x268   : > { %v1361_v42 = vpop.permute.xlu1 %1360 }
 0x269   : > { %1755 = vtanh.f32 %v1442_v40  ;;  %v1435_v44 = vmul.f32 %v1420_v41, %v1361_v42 }
 0x26b   : > { %v1443_v45 = vmul.f32 0.5, %v1435_v44 }
 0x26c   : > { %v1365_v46 = vpop.permute.xlu1 %1364 }
 0x26d   : > { %1757 = vtanh.f32 %v1443_v45  ;;  %v1436_v47 = vmul.f32 %v1420_v41, %v1365_v46 }
 0x26f   : > { %v1754_v48 = vpop.eup %1753  ;;  %v1444_v49 = vmul.f32 0.5, %v1436_v47 }
 0x270   : > { %v1457_v51 = vmul.f32 0.5, %v1754_v48  ;;  %v1372_v52 = vpop.permute.xlu1 %1371 }
 0x271   : > { %1759 = vtanh.f32 %v1444_v49  ;;  %v1437_v53 = vmul.f32 %v1424_v50, %v1372_v52 }
 0x272   : > { %v1465_v54 = vadd.f32 0.5, %v1457_v51 }
 0x273   : > { %v1756_v55 = vpop.eup %1755  ;;  %v1445_v56 = vmul.f32 0.5, %v1437_v53 }
 0x274   : > { %v1473_v58 = vmul.f32 %v1465_v54, %v2013_v1  ;;  %v1458_v59 = vmul.f32 0.5, %v1756_v55  ;;  %v1376_v61 = vpop.permute.xlu1 %1375 }
 0x275   : > { %1761 = vtanh.f32 %v1445_v56  ;;  %v1438_v62 = vmul.f32 %v1424_v50, %v1376_v61 }
 0x276   : > { %1481 = vst.msk [vmem:[%s2165_s8] sm:$0xff] %vm197_vm0, %v1473_v58  ;;  %v1466_v63 = vadd.f32 0.5, %v1458_v59 }
 0x277   : > { %v1758_v3 = vpop.eup %1757  ;;  %v1446_v4 = vmul.f32 0.5, %v1438_v62 }
 0x278   : > { %v1474_v43 = vmul.f32 %v1466_v63, %v2021_v5  ;;  %v1459_v1 = vmul.f32 0.5, %v1758_v3  ;;  %v1383_v6 = vpop.permute.xlu1 %1382 }
 0x279   : > { %1763 = vtanh.f32 %v1446_v4  ;;  %v1439_v7 = vmul.f32 %v1428_v34, %v1383_v6 }
 0x27a   : > { %1482 = vst.msk [vmem:[%s2165_s8 + $0x8] sm:$0xff] %vm197_vm0, %v1474_v43  ;;  %v1467_v10 = vadd.f32 0.5, %v1459_v1 }
 0x27b   : > { %v1760_v35 = vpop.eup %1759  ;;  %v1447_v12 = vmul.f32 0.5, %v1439_v7 }
 0x27c   : > { %v1475_v13 = vmul.f32 %v1467_v10, %v2011_v0  ;;  %v1460_v14 = vmul.f32 0.5, %v1760_v35  ;;  %v1387_v15 = vpop.permute.xlu1 %1386 }
 0x27d   : > { %1765 = vtanh.f32 %v1447_v12  ;;  %v1440_v29 = vmul.f32 %v1428_v34, %v1387_v15 }
 0x27e   : > { %1483 = vst.msk [vmem:[%s2165_s8 + $0x10] sm:$0xff] %vm197_vm0, %v1475_v13  ;;  %v1468_v5 = vadd.f32 0.5, %v1460_v14 }
 0x27f   : > { %v1762_v11 = vpop.eup %1761  ;;  %v1448_v39 = vmul.f32 0.5, %v1440_v29 }
 0x280   : > { %v1476_v18 = vmul.f32 %v1468_v5, %v2015_v2  ;;  %v1461_v19 = vmul.f32 0.5, %v1762_v11 }
 0x281   : > { %1767 = vtanh.f32 %v1448_v39 }
 0x282   : > { %1484 = vst.msk [vmem:[%s2165_s8 + $0x18] sm:$0xff] %vm197_vm0, %v1476_v18  ;;  %v1469_v0 = vadd.f32 0.5, %v1461_v19 }
 0x283   : > { %v1764_v20 = vpop.eup %1763 }
 0x284   : > { %v1477_v21 = vmul.f32 %v1469_v0, %v2029_v9  ;;  %v1462_v22 = vmul.f32 0.5, %v1764_v20 }
 0x286   : > { %1485 = vst.msk [vmem:[%s2165_s8 + $0x20] sm:$0xff] %vm197_vm0, %v1477_v21  ;;  %v1470_v23 = vadd.f32 0.5, %v1462_v22 }
 0x287   : > { %v1766_v24 = vpop.eup %1765 }
 0x288   : > { %v1478_v2 = vmul.f32 %v1470_v23, %v2027_v8  ;;  %v1463_v25 = vmul.f32 0.5, %v1766_v24 }
 0x28a   : > { %1486 = vst.msk [vmem:[%s2165_s8 + $0x28] sm:$0xff] %vm197_vm0, %v1478_v2  ;;  %v1471_v26 = vadd.f32 0.5, %v1463_v25 }
 0x28b   : > { %v1768_v27 = vpop.eup %1767 }
 0x28c   : > { %v1479_v28 = vmul.f32 %v1471_v26, %v2041_v17  ;;  %v1464_v30 = vmul.f32 0.5, %v1768_v27 }
 0x28e   : > { %1487 = vst.msk [vmem:[%s2165_s8 + $0x30] sm:$0xff] %vm197_vm0, %v1479_v28  ;;  %v1472_v9 = vadd.f32 0.5, %v1464_v30 }
 0x290   : > { %v1480_v8 = vmul.f32 %v1472_v9, %v2039_v16 }
 0x292   : > { %1488 = vst.msk [vmem:[%s2165_s8 + $0x38] sm:$0xff] %vm197_vm0, %v1480_v8 }
 0x293   : > { %1812 = shalt.err (!%p1809_p2)
}
 0x294   : > { %s1813_s9 = scalar_lea.hbm %s2193_s26, 1024  ;;  %s1817_s23 = scalar_lea.hbm %s2245_s3, 2048 }
 0x295   : > { %p1814_p4 = scmp.ne.s32.totalorder %s2193_s26, %s1813_s9  ;;  %p1818_p9 = scmp.lt.u32.totalorder %s2193_s26, %s2245_s3 }
 0x296   : > { %p1819_p1 = scmp.lt.u32.totalorder %s1817_s23, %s1813_s9  ;;  %p1821_p6 = scmp.lt.u32.totalorder %s1813_s9, %s2193_s26 }
 0x297   : > { %p1815_p5 = pnand %p1814_p4, %p2252_p11 }
 0x298   : > { %p1820_p3 = por %p1819_p1, %p1818_p9 }
 0x299   : > { %p1816_p7 = pneg %p1815_p5 }
 0x29a   : > { %p1822_p12 = por %p1821_p6, %p1820_p3 }
 0x29c   : > { %p1823_p13 = pnand %p1822_p12, %p1816_p7 }
 0x29e   : > { %1826 = shalt.err (!%p1823_p13)
}
 0x29f   : > { %s1875_s7 = smov 128   ;;  %s1876_s8 = smov 8  }
 0x2a0   : > { %1700 = dma.vmem_to_hbm [thread:$0]  (%p2252_p11), %s2195_s19, 1024, %s2193_s26, %s1490_s27, %s1875_s7, %s1875_s7, %s1876_s8  }
 0x2a1 PF: > { %s1518_s17 = sand.u32 1, %s1853_s12   ;;  %p2253_p8 = scmp.ne.s32.totalorder %s2250_s25, 0 }
 0x2a2   : > { %p2254_p10 = scmp.ge.s32.totalorder %s1865_s15, 2  ;;  %s1519_s20 = scalar_lea.sflag [#allocation4], %s1518_s17 }
 0x2a4   : > { %p1707_p0 = pnand %p2254_p10, %p2253_p8 }
 0x2a6   : > { %1848 = dma.done.wait (!%p1707_p0), %s1519_s20, 1024  }
 0x2a7   : > { %1850 = vsyncadd (!%p1707_p0), %s1519_s20, 4294966272  ;;  %p16_p2 = scmp.ge.s32.totalorder %s1922_s18, 4   ;;  %s2255_s12 = smov %s1857_s13 }
 0x2a8   : > { %s2256_s13 = smov %s1861_s14  ;;  %s2257_s14 = smov %s1934_s21 }
 0x2a9   : > { %s2258_s15 = smov %s1922_s18  ;;  %18 = sbr.rel (!%p16_p2) target bundleno = 5 (0x5), region = 77 }
 0x2b0   :  { %1524 = vsyncpa [#allocation3], 1 }
 0x2b1   :  { %1526 = vsyncpa [#allocation3 + $0x1], 1 }
 0x2b2   :  { %1527 = vsyncpa [#allocation4], 1 }
 0x2b3   :  { %1529 = vsyncpa [#allocation4 + $0x1], 1 }

</bundles_post_ra>
